<compile_context>
chip_gen: v7x
topology: tpu7x:2x2x1
jax: 0.10.0
libtpu: 0.0.40
codegen_flags: <defaults>
</compile_context>

<pallas_src>
import jax
import jax.numpy as jnp
from jax import lax
from jax.experimental import pallas as pl
from jax.experimental.pallas import tpu as pltpu


def _round_up(x, m):
    return ((x + m - 1) // m) * m


def _cdiv(a, b):
    return -(-a // b)


def generator_kernel(z_ref, w1t_ref, b1_ref, w2t_ref, b2_ref, o_ref):
    # Layer 1 on the MXU: (hidden, latent) @ (latent, tile_b) -> (hidden, tile_b)
    # batch sits on the 128-lane axis; accumulate in f32.
    h = lax.dot_general(
        w1t_ref[...], z_ref[...],
        dimension_numbers=(((1,), (0,)), ((), ())),
        preferred_element_type=jnp.float32,
    )                                                   # (hidden, tile_b) f32
    h = jnp.maximum(h + b1_ref[...], 0.0)               # VPU bias + ReLU (f32)

    # Layer 2 on the (otherwise idle) MXU: (1, hidden) @ (hidden, tile_b)
    # -> (1, tile_b), lane-dense.  Cast of h matches the MXU input dtype
    # (bf16 by default -> single-pass MXU; no-op in the f32 path).
    y = lax.dot_general(
        w2t_ref[...], h.astype(w2t_ref.dtype),
        dimension_numbers=(((1,), (0,)), ((), ())),
        preferred_element_type=jnp.float32,
    )                                                   # (1, tile_b) f32
    y = y + b2_ref[0, 0]                                # scalar bias from SMEM
    o_ref[...] = jnp.tanh(y).astype(o_ref.dtype)        # EUP tanh, lane-dense store


def generator_forward(z, w1, b1, w2, b2, *, max_tile_b=8192,
                      compute_dtype=jnp.bfloat16):
    """Generator forward pass.

    z : (B, latent) f32;  w1: (latent, hidden);  b1: (1, hidden) or (hidden,)
    w2: (hidden, 1);      b2: (1, 1) / (1,) / scalar.   Returns (B, 1) f32.

    compute_dtype controls the MXU input precision (bf16 default, f32 exact);
    accumulation and the VPU/EUP math are always f32.
    """
    B, latent = z.shape
    hidden = w1.shape[1]
    out_dim = w2.shape[1]
    assert out_dim == 1, "kernel is specialized for output_dim == 1"

    cdt = jnp.dtype(compute_dtype)

    # One-time layout plumbing for the tiny resident weights.
    w1t = jnp.transpose(w1).astype(cdt)                       # (hidden, latent)
    b1c = jnp.reshape(b1, (hidden, 1)).astype(jnp.float32)    # (hidden, 1)
    w2t = jnp.reshape(w2, (1, hidden)).astype(cdt)            # (1, hidden)
    b2s = jnp.reshape(b2, (1, 1)).astype(jnp.float32)         # (1, 1) scalar

    # ---- Batch tile selection ------------------------------------------------
    # tile_b is always a multiple of 128 (lane axis); pick the largest tile
    # (<= max_tile_b) that covers B with minimal padding, and guarantee >= 2
    # grid steps when possible so both TensorCores get work on v7x.
    max_tile_b = max(128, (int(max_tile_b) // 128) * 128)
    b128 = _round_up(B, 128)
    steps = max(1, _cdiv(b128, max_tile_b))
    if b128 >= 256:
        steps = max(steps, 2)                 # v7x megacore: >= 2 parallel steps
    tile_b = _round_up(_cdiv(b128, steps), 128)
    steps = _cdiv(b128, tile_b)
    b_total = steps * tile_b
    assert tile_b % 128 == 0

    # ---- Stream z batch-last -------------------------------------------------
    # Single fused wrapper pass: transpose + cast + (small) pad.  The streamed
    # block is then (latent, tile_b): lane-dense, tiny VMEM footprint.
    zt = jnp.transpose(z).astype(cdt)                          # (latent, B)
    if b_total != B:
        zt = jnp.pad(zt, ((0, 0), (0, b_total - B)))           # pads only cols

    grid = (steps,)
    out_t = pl.pallas_call(
        generator_kernel,
        out_shape=jax.ShapeDtypeStruct((out_dim, b_total), jnp.float32),
        grid=grid,
        in_specs=[
            pl.BlockSpec((latent, tile_b), lambda i: (0, i)),   # streamed z (lane-dense)
            pl.BlockSpec((hidden, latent), lambda i: (0, 0)),   # resident w1^T
            pl.BlockSpec((hidden, 1), lambda i: (0, 0)),        # resident b1
            pl.BlockSpec((1, hidden), lambda i: (0, 0)),        # resident w2^T
            pl.BlockSpec((1, 1), lambda i: (0, 0),
                         memory_space=pltpu.MemorySpace.SMEM),  # scalar b2
        ],
        out_specs=pl.BlockSpec((out_dim, tile_b), lambda i: (0, i)),  # lane-dense
        compiler_params=pltpu.CompilerParams(
            dimension_semantics=("parallel",)),   # both TCs on v7x; harmless on v5e/v6e
    )(zt, w1t, b1c, w2t, b2s)

    return jnp.transpose(out_t[:, :B])            # (B, out_dim)


def init_generator_params(key, latent_dim, hidden_dim, output_dim):
    """PyTorch nn.Linear-style init: uniform(-1/sqrt(fan_in), 1/sqrt(fan_in))."""
    k1, k2, k3, k4 = jax.random.split(key, 4)
    lim1 = 1.0 / jnp.sqrt(latent_dim)
    lim2 = 1.0 / jnp.sqrt(hidden_dim)
    w1 = jax.random.uniform(k1, (latent_dim, hidden_dim), jnp.float32, -lim1, lim1)
    b1 = jax.random.uniform(k2, (1, hidden_dim), jnp.float32, -lim1, lim1)
    w2 = jax.random.uniform(k3, (hidden_dim, output_dim), jnp.float32, -lim2, lim2)
    b2 = jax.random.uniform(k4, (1, output_dim), jnp.float32, -lim2, lim2)
    return w1, b1, w2, b2


if __name__ == "__main__":
    latent_dim = 10
    hidden_dim = 128
    output_dim = 1
    batch = 8

    key = jax.random.PRNGKey(0)
    k_params, k_z, k_z2 = jax.random.split(key, 3)
    w1, b1, w2, b2 = init_generator_params(k_params, latent_dim, hidden_dim, output_dim)
    z = jax.random.normal(k_z, (batch, latent_dim), jnp.float32)

    def ref_fn(zz):
        return jnp.tanh(jnp.maximum(zz @ w1 + b1, 0.0) @ w2 + b2)

    # Small batch, default bf16 MXU-input path (single tile, 128 lanes).
    out = jax.block_until_ready(generator_forward(z, w1, b1, w2, b2))
    assert out.shape == (batch, output_dim)
    assert jnp.allclose(out, ref_fn(z), atol=5e-2), "mismatch vs reference (bf16 default)"

    # Exact f32 path on the same small batch.
    out_f32 = jax.block_until_ready(
        generator_forward(z, w1, b1, w2, b2, compute_dtype=jnp.float32))
    assert jnp.allclose(out_f32, ref_fn(z), atol=1e-5), "mismatch vs reference (f32)"

    # Multi-tile grid + ragged tail (exercises resident weights, batch-last
    # streaming, lane padding, and the >=2-step megacore split).
    z2 = jax.random.normal(k_z2, (300, latent_dim), jnp.float32)
    out2 = jax.block_until_ready(
        generator_forward(z2, w1, b1, w2, b2, max_tile_b=128,
                          compute_dtype=jnp.float32))
    assert out2.shape == (300, output_dim)
    assert jnp.allclose(out2, ref_fn(z2), atol=1e-5), "mismatch vs reference (multi-tile)"

    out3 = jax.block_until_ready(generator_forward(z2, w1, b1, w2, b2))
    assert out3.shape == (300, output_dim)
    assert jnp.allclose(out3, ref_fn(z2), atol=5e-2), "mismatch vs reference (bf16 multi-tile)"

    print("KERNEL_OK")
</pallas_src>

<mosaic_0001>
module attributes {stable_mosaic.version = 11 : i64} {
  func.func @generator_kernel(%arg0: i32, %arg1: memref<10x128xbf16, #tpu.memory_space<vmem>>, %arg2: memref<128x10xbf16, #tpu.memory_space<vmem>>, %arg3: memref<128x1xf32, #tpu.memory_space<vmem>>, %arg4: memref<1x128xbf16, #tpu.memory_space<vmem>>, %arg5: memref<1x1xf32, #tpu.memory_space<smem>>, %arg6: memref<1x128xf32, #tpu.memory_space<vmem>>) attributes {dimension_semantics = [#tpu.dimension_semantics<parallel>], iteration_bounds = array<i64: 1>, scalar_prefetch = 0 : i64, scratch_operands = 0 : i64, tpu.core_type = #tpu.core_type<tc>, window_params = [{transform_indices = @transform_0, window_bounds = array<i64: 10, 128>}, {pipeline_mode = #tpu.pipeline_mode<synchronous>, transform_indices = @transform_1, window_bounds = array<i64: 128, 10>}, {pipeline_mode = #tpu.pipeline_mode<synchronous>, transform_indices = @transform_2, window_bounds = array<i64: 128, 1>}, {pipeline_mode = #tpu.pipeline_mode<synchronous>, transform_indices = @transform_3, window_bounds = array<i64: 1, 128>}, {transform_indices = @transform_4, window_bounds = array<i64: 1, 1>}, {transform_indices = @transform_5, window_bounds = array<i64: 1, 128>}]} {
    %c0 = arith.constant 0 : index
    %c0_0 = arith.constant 0 : index
    %0 = vector.load %arg2[%c0, %c0_0] : memref<128x10xbf16, #tpu.memory_space<vmem>>, vector<128x10xbf16>
    %c0_1 = arith.constant 0 : index
    %c0_2 = arith.constant 0 : index
    %1 = vector.load %arg1[%c0_1, %c0_2] : memref<10x128xbf16, #tpu.memory_space<vmem>>, vector<10x128xbf16>
    %cst = arith.constant dense<0.000000e+00> : vector<128x128xf32>
    %2 = tpu.matmul %0, %1, %cst {dimension_numbers = #tpu.dot_dimension_numbers<[1], [0], [0], [1], [0, 0, 1, 1], [], []>} : vector<128x10xbf16>, vector<10x128xbf16>, vector<128x128xf32> -> vector<128x128xf32>
    %c0_3 = arith.constant 0 : index
    %c0_4 = arith.constant 0 : index
    %3 = vector.load %arg3[%c0_3, %c0_4] : memref<128x1xf32, #tpu.memory_space<vmem>>, vector<128x1xf32>
    %4 = vector.broadcast %3 : vector<128x1xf32> to vector<128x128xf32>
    %5 = arith.addf %2, %4 : vector<128x128xf32>
    %cst_5 = arith.constant 0.000000e+00 : f32
    %6 = vector.broadcast %cst_5 : f32 to vector<128x128xf32>
    %7 = arith.maximumf %5, %6 : vector<128x128xf32>
    %c0_6 = arith.constant 0 : index
    %c0_7 = arith.constant 0 : index
    %8 = vector.load %arg4[%c0_6, %c0_7] : memref<1x128xbf16, #tpu.memory_space<vmem>>, vector<1x128xbf16>
    %9 = arith.truncf %7 : vector<128x128xf32> to vector<128x128xbf16>
    %cst_8 = arith.constant dense<0.000000e+00> : vector<1x128xf32>
    %10 = tpu.matmul %8, %9, %cst_8 {dimension_numbers = #tpu.dot_dimension_numbers<[1], [0], [0], [1], [0, 0, 1, 1], [], []>} : vector<1x128xbf16>, vector<128x128xbf16>, vector<1x128xf32> -> vector<1x128xf32>
    %c0_9 = arith.constant 0 : index
    %c0_10 = arith.constant 0 : index
    %11 = memref.load %arg5[%c0_9, %c0_10] : memref<1x1xf32, #tpu.memory_space<smem>>
    %12 = vector.broadcast %11 : f32 to vector<1x128xf32>
    %13 = arith.addf %10, %12 : vector<1x128xf32>
    %14 = math.tanh %13 : vector<1x128xf32>
    %c0_11 = arith.constant 0 : index
    %c0_12 = arith.constant 0 : index
    %15 = vector.load %arg6[%c0_11, %c0_12] : memref<1x128xf32, #tpu.memory_space<vmem>>, vector<1x128xf32>
    tpu.vector_store %arg6[%c0_11, %c0_12], %14 {strides = array<i32>} : memref<1x128xf32, #tpu.memory_space<vmem>>, vector<1x128xf32>,
    return
  }
  func.func @transform_0(%arg0: i32) -> (i32, i32) {
    %c0_i32 = arith.constant 0 : i32
    %c0_i32_0 = arith.constant 0 : i32
    return %c0_i32, %arg0 : i32, i32
  }
  func.func @transform_1(%arg0: i32) -> (i32, i32) {
    %c0_i32 = arith.constant 0 : i32
    %c0_i32_0 = arith.constant 0 : i32
    %c0_i32_1 = arith.constant 0 : i32
    return %c0_i32, %c0_i32_0 : i32, i32
  }
  func.func @transform_2(%arg0: i32) -> (i32, i32) {
    %c0_i32 = arith.constant 0 : i32
    %c0_i32_0 = arith.constant 0 : i32
    %c0_i32_1 = arith.constant 0 : i32
    return %c0_i32, %c0_i32_0 : i32, i32
  }
  func.func @transform_3(%arg0: i32) -> (i32, i32) {
    %c0_i32 = arith.constant 0 : i32
    %c0_i32_0 = arith.constant 0 : i32
    %c0_i32_1 = arith.constant 0 : i32
    return %c0_i32, %c0_i32_0 : i32, i32
  }
  func.func @transform_4(%arg0: i32) -> (i32, i32) {
    %c0_i32 = arith.constant 0 : i32
    %c0_i32_0 = arith.constant 0 : i32
    %c0_i32_1 = arith.constant 0 : i32
    return %c0_i32, %c0_i32_0 : i32, i32
  }
  func.func @transform_5(%arg0: i32) -> (i32, i32) {
    %c0_i32 = arith.constant 0 : i32
    %c0_i32_0 = arith.constant 0 : i32
    return %c0_i32, %arg0 : i32, i32
  }
}

</mosaic_0001>

<bundles_post_ra>
// kernel: tpu_custom_call.1
= control target key start
LH: loop header
LB: loop body
LE: loop exit
PB: predicated region body
PF: predicated region fallthrough
CT: control target
= control target key end

     0   :  { %vm207_vm0 = vcmask 1044480   ;;  %vm182_vm1 = vcmask 80896   ;;  %v506_v5 = vmov 0   ;;  %s650_s0 = inlined_call_operand.vmem [shape: bf16[10,128], index: 0, kind: input, shape index: {}]   ;;  %s651_s1 = inlined_call_operand.vmem [shape: bf16[128,10], index: 1, kind: input, shape index: {}]   ;;  %s652_s2 = inlined_call_operand.vmem [shape: f32[128,1], index: 2, kind: input, shape index: {}]   ;;  %s653_s3 = inlined_call_operand.vmem [shape: bf16[1,128], index: 3, kind: input, shape index: {}]   ;;  %s654_s4 = inlined_call_operand.<no memory space> [shape: f32[1,1], index: 4, kind: input, shape index: {}]   ;;  %s655_s5 = inlined_call_operand.hbm [shape: f32[1,128], index: 5, kind: output, shape index: {}]  }
   0x1   :  { %v471_v0 = vld [vmem:[%s650_s0] sm:$0x1f]   ;;  %v473_v3 = vld [vmem:[%s651_s1 + $0x8] sm:$0xff]   ;;  %v474_v4 = vld [vmem:[%s651_s1 + $0x10] sm:$0xff]   ;;  %469 = vset.pattern.permute.xlu0 %v506_v5  ;;  %470 = vset.pattern.permute.xlu1 %v506_v5 }
   0x2   :  { %v472_v1 = vld [vmem:[%s651_s1] sm:$0xff]   ;;  %464 = vmatprep.subr.msk.bf16.mxu0 %vm207_vm0, %v471_v0  ;;  %v209_v2 = vsel %vm207_vm0, %v471_v0, 0  ;;  %v43_v7 = vld [vmem:[%s652_s2 + $0x10] sm:$0xff]  ;;  %v475_v8 = vld [vmem:[%s651_s1 + $0x18] sm:$0xff]  }
   0x3   :  { %427 = vmatpush3.bf16.msra.mxu0 %v209_v2  ;;  %428 = vmatprep.mubr.msk.bf16.mxu0 %vm182_vm1, %v472_v1  ;;  %v41_v6 = vld [vmem:[%s652_s2] sm:$0xff]  ;;  %v42_v10 = vld [vmem:[%s652_s2 + $0x8] sm:$0xff]  ;;  %v44_v11 = vld [vmem:[%s652_s2 + $0x18] sm:$0xff] }
   0x4   :  { %59 = vperm.xlu0 %469, %v41_v6   ;;  %69 = vperm.xlu1 %470, %v43_v7   ;;  %v476_v9 = vld [vmem:[%s651_s1 + $0x20] sm:$0xff]  }
   0x6   :  { %429 = vmatmul.mubr.msk.bf16.vlgmr.msra.gmra.mrb[0].mxu0 %vm182_vm1, %v473_v3 }
   0x7   :  { %432 = vmatprep.mubr.msk.bf16.mxu0 %vm182_vm1, %v474_v4 }
   0x8   :  { %64 = vperm.xlu0 %469, %v42_v10  }
   0xe   :  { %433 = vmatmul.mubr.msk.bf16.gmra.mrb[4].mxu0 %vm182_vm1, %v475_v8 }
   0xf   :  { %11 = vsyncpa [#allocation4], 0  ;;  %436 = vmatprep.mubr.msk.bf16.mxu0 %vm182_vm1, %v476_v9  ;;  %74 = vperm.xlu1 %470, %v44_v11   ;;  %v45_v12 = vld [vmem:[%s652_s2 + $0x20] sm:$0xff]  ;;  %v46_v13 = vld [vmem:[%s652_s2 + $0x28] sm:$0xff]  ;;  %v507_v27 = vmov 0.0   ;;  %vm508_vm2 = vmmov 0  }
  0x10   :  { %v477_v14 = vld [vmem:[%s651_s1 + $0x28] sm:$0xff]   ;;  %79 = vperm.xlu0 %469, %v45_v12   ;;  %v478_v15 = vld [vmem:[%s651_s1 + $0x30] sm:$0xff]   ;;  %v48_v17 = vld [vmem:[%s652_s2 + $0x38] sm:$0xff]  ;;  %444 = vmatprep.subr.bf16.mxu1 %v507_v27  ;;  %s509_s18 = smov [#allocation3]  }
  0x11   :  { %v47_v16 = vld [vmem:[%s652_s2 + $0x30] sm:$0xff]  ;;  %v49_v18 = vld [vmem:[%s652_s2 + $0x40] sm:$0xff]  ;;  %v50_v19 = vld [vmem:[%s652_s2 + $0x48] sm:$0xff]  ;;  %460 = vmatprep.mubr.msk.bf16.mxu1 %vm508_vm2, %v507_v27  ;;  %s383_s19 = sshll.u32 %s509_s18, 4  ;;  %s384_s19 = int_to_ptr.vmem [resolvable:$true] %s383_s19 }
  0x12   :  { %v479_v20 = vld [vmem:[%s651_s1 + $0x38] sm:$0xff]   ;;  %v51_v21 = vld [vmem:[%s652_s2 + $0x50] sm:$0xff]  ;;  %v53_v23 = vld [vmem:[%s652_s2 + $0x60] sm:$0xff]  ;;  %s482_s20 = scalar_lea.vmem %s384_s19, 16  ;;  %s486_s21 = scalar_lea.vmem %s384_s19, 32 }
  0x13   :  { %84 = vperm.xlu1 %470, %v46_v13   ;;  %v52_v22 = vld [vmem:[%s652_s2 + $0x58] sm:$0xff]  ;;  %v54_v24 = vld [vmem:[%s652_s2 + $0x68] sm:$0xff]  ;;  %v55_v25 = vld [vmem:[%s652_s2 + $0x70] sm:$0xff]  ;;  %p483_p0 = scmp.ne.s32.totalorder %s384_s19, %s482_s20  ;;  %p487_p1 = scmp.lt.s32.totalorder %s384_s19, %s384_s19 }
  0x14   :  { %89 = vperm.xlu0 %469, %v47_v16   ;;  %v56_v26 = vld [vmem:[%s652_s2 + $0x78] sm:$0xff]  ;;  %p488_p2 = scmp.lt.s32.totalorder %s486_s21, %s482_s20 }
  0x16   :  { %437 = vmatmul.mubr.msk.bf16.gmra.mrb[8].mxu0 %vm182_vm1, %v477_v14  ;;  %p489_p3 = por %p488_p2, %p487_p1 }
  0x17   :  { %440 = vmatprep.mubr.msk.bf16.mxu0 %vm182_vm1, %v478_v15  ;;  %94 = vperm.xlu1 %470, %v48_v17  }
  0x18   :  { %99 = vperm.xlu0 %469, %v49_v18   ;;  %p490_p4 = pnand %p489_p3, %p483_p0 }
  0x1b   :  { %104 = vperm.xlu1 %470, %v50_v19  }
  0x1c   :  { %109 = vperm.xlu0 %469, %v51_v21  }
  0x1e   :  { %441 = vmatmul.mubr.msk.bf16.gmra.mrb[12].mxu0 %vm182_vm1, %v479_v20 }
  0x1f   :  { %114 = vperm.xlu1 %470, %v52_v22  }
  0x20   :  { %119 = vperm.xlu0 %469, %v53_v23  }
  0x23   :  { %124 = vperm.xlu1 %470, %v54_v24  }
  0x24   :  { %129 = vperm.xlu0 %469, %v55_v25  }
  0x27   :  { %134 = vperm.xlu1 %470, %v56_v26  }
  0x83   :  { %v60_v28 = vpop.permute.xlu0 %59  ;;  %v70_v29 = vpop.permute.xlu1 %69 }
  0x87   :  { %v65_v30 = vpop.permute.xlu0 %64 }
  0x8e   :  { %v75_v31 = vpop.permute.xlu1 %74 }
  0x8f   :  { %v80_v32 = vpop.permute.xlu0 %79 }
  0x92   :  { %v85_v33 = vpop.permute.xlu1 %84 }
  0x93   :  { %v90_v34 = vpop.permute.xlu0 %89 }
  0x96   :  { %v95_v38 = vpop.permute.xlu1 %94 }
  0x97   :  { %v100_v46 = vpop.permute.xlu0 %99 }
  0x9a   :  { %v105_v50 = vpop.permute.xlu1 %104 }
  0x9b   :  { %v110_v59 = vpop.permute.xlu0 %109 }
  0x9e   :  { %v115_v63 = vpop.permute.xlu1 %114 }
  0x9f   :  { %v120_v7 = vpop.permute.xlu0 %119 }
  0xa2   :  { %v125_v12 = vpop.permute.xlu1 %124 }
  0xa3   :  { %v130_v19 = vpop.permute.xlu0 %129 }
  0xa6   :  { %v135_v24 = vpop.permute.xlu1 %134 }
  0xd9   :  { %v430_v35 = vpop.f32.mrb[0].mxu0 }
  0xda   :  { %v254_v36 = vadd.f32 %v430_v35, %v70_v29  ;;  %v245_v37 = vpop.f32.mrb[1].mxu0 }
  0xdb   :  { %v246_v39 = vadd.f32 %v245_v37, %v60_v28  ;;  %v431_v40 = vpop.f32.mrb[2].mxu0  ;;  %v324_v37 = vld [vmem:[%s653_s3] sm:$0x1] }
  0xdc   :  { %v257_v41 = vadd.f32 %v431_v40, %v75_v31  ;;  %v248_v42 = vpop.f32.mrb[3].mxu0  ;;  %v310_v44 = vmax.f32 %v254_v36, 0.0 }
  0xdd   :  { %v249_v43 = vadd.f32 %v248_v42, %v65_v30  ;;  %v308_v47 = vmax.f32 %v246_v39, 0.0 }
  0xde   :  { %v311_v45 = vmax.f32 %v257_v41, 0.0 }
  0xdf   :  { %v309_v48 = vmax.f32 %v249_v43, 0.0 }
  0xe0   :  { %v326_v49 = vpack.c.bf16 %v311_v45, %v310_v44 }
  0xe1   :  { %v434_v51 = vpop.f32.mrb[4].mxu0  ;;  %v325_v52 = vpack.c.bf16 %v309_v48, %v308_v47 }
  0xe2   :  { %v270_v53 = vadd.f32 %v434_v51, %v90_v34  ;;  %v261_v54 = vpop.f32.mrb[5].mxu0 }
  0xe3   :  { %v262_v55 = vadd.f32 %v261_v54, %v80_v32  ;;  %v435_v56 = vpop.f32.mrb[6].mxu0  ;;  %445 = vmatpush3.bf16.msra.mxu1 %v325_v52 }
  0xe4   :  { %v273_v57 = vadd.f32 %v435_v56, %v95_v38  ;;  %v264_v58 = vpop.f32.mrb[7].mxu0  ;;  %446 = vmatprep.subr.bf16.mxu1 %v507_v27  ;;  %v314_v61 = vmax.f32 %v270_v53, 0.0  ;;  %v334_v38 = vstv %s654_s4 }
  0xe5   :  { %v265_v60 = vadd.f32 %v264_v58, %v85_v33  ;;  %v312_v0 = vmax.f32 %v262_v55, 0.0 }
  0xe6   :  { %v315_v62 = vmax.f32 %v273_v57, 0.0 }
  0xe7   :  { %v313_v1 = vmax.f32 %v265_v60, 0.0  ;;  %447 = vmatpush3.bf16.msra.mxu1 %v326_v49 }
  0xe8   :  { %v328_v2 = vpack.c.bf16 %v315_v62, %v314_v61  ;;  %448 = vmatprep.subr.bf16.mxu1 %v507_v27 }
  0xe9   :  { %v327_v3 = vpack.c.bf16 %v313_v1, %v312_v0  ;;  %v438_v4 = vpop.f32.mrb[8].mxu0 }
  0xea   :  { %v286_v5 = vadd.f32 %v438_v4, %v110_v59  ;;  %v277_v6 = vpop.f32.mrb[9].mxu0 }
  0xeb   :  { %v278_v8 = vadd.f32 %v277_v6, %v100_v46  ;;  %v439_v9 = vpop.f32.mrb[10].mxu0  ;;  %449 = vmatpush3.bf16.msra.mxu1 %v327_v3 }
  0xec   :  { %v289_v10 = vadd.f32 %v439_v9, %v115_v63  ;;  %v280_v11 = vpop.f32.mrb[11].mxu0  ;;  %450 = vmatprep.subr.bf16.mxu1 %v507_v27  ;;  %v318_v14 = vmax.f32 %v286_v5, 0.0 }
  0xed   :  { %v281_v13 = vadd.f32 %v280_v11, %v105_v50  ;;  %v316_v16 = vmax.f32 %v278_v8, 0.0 }
  0xee   :  { %v319_v15 = vmax.f32 %v289_v10, 0.0 }
  0xef   :  { %v317_v17 = vmax.f32 %v281_v13, 0.0  ;;  %451 = vmatpush3.bf16.msra.mxu1 %v328_v2 }
  0xf0   :  { %v330_v18 = vpack.c.bf16 %v319_v15, %v318_v14  ;;  %452 = vmatprep.subr.bf16.mxu1 %v507_v27 }
  0xf1   :  { %v329_v20 = vpack.c.bf16 %v317_v17, %v316_v16  ;;  %v442_v21 = vpop.f32.mrb[12].mxu0 }
  0xf2   :  { %v302_v22 = vadd.f32 %v442_v21, %v130_v19  ;;  %v293_v23 = vpop.f32.mrb[13].mxu0 }
  0xf3   :  { %v294_v25 = vadd.f32 %v293_v23, %v120_v7  ;;  %v443_v26 = vpop.f32.mrb[14].mxu0  ;;  %453 = vmatpush3.bf16.msra.mxu1 %v329_v20 }
  0xf4   :  { %v305_v28 = vadd.f32 %v443_v26, %v135_v24  ;;  %v296_v29 = vpop.f32.mrb[15].mxu0  ;;  %454 = vmatprep.subr.bf16.mxu1 %v507_v27  ;;  %v322_v31 = vmax.f32 %v302_v22, 0.0 }
  0xf5   :  { %v297_v30 = vadd.f32 %v296_v29, %v125_v12  ;;  %v320_v33 = vmax.f32 %v294_v25, 0.0 }
  0xf6   :  { %v323_v32 = vmax.f32 %v305_v28, 0.0 }
  0xf7   :  { %v321_v34 = vmax.f32 %v297_v30, 0.0  ;;  %455 = vmatpush3.bf16.msra.mxu1 %v330_v18 }
  0xf8   :  { %v332_v35 = vpack.c.bf16 %v323_v32, %v322_v31  ;;  %456 = vmatprep.subr.bf16.mxu1 %v507_v27 }
  0xf9   :  { %v331_v36 = vpack.c.bf16 %v321_v34, %v320_v33 }
  0xfb   :  { %457 = vmatpush3.bf16.msra.mxu1 %v331_v36 }
  0xfc   :  { %458 = vmatprep.subr.bf16.mxu1 %v507_v27 }
  0xff   :  { %459 = vmatpush3.bf16.msra.mxu1 %v332_v35 }
 0x102   :  { %461 = vmatmul.mubr.bf16.vlgmr.msra.gmra.mrb[0].mxu1 %v324_v37 }
 0x1d5   :  { %v369_v39 = vpop.f32.mrb[0].mxu1 }
 0x1d6   :  { %v370_v40 = vadd.f32 %v369_v39, %v334_v38  ;;  %v462_v41 = vpop.f32.mrb[1].mxu1 }
 0x1d7   :  { %v372_v42 = vpop.f32.mrb[2].mxu1 }
 0x1d8   :  { %480 = vtanh.f32 %v370_v40  ;;  %v463_v43 = vpop.f32.mrb[3].mxu1 }
 0x1e2   :  { %v481_v27 = vpop.eup %480 }
 0x1e3   :  { %376 = vst [vmem:[#allocation3] sm:$0x1] %v481_v27 }
 0x1e4   :  { %493 = shalt.err (!%p490_p4)
}
 0x1e5   :  { %s494_s22 = scalar_lea.hbm %s655_s5, 16 }
 0x1e6   :  { %p495_p5 = scmp.ne.s32.totalorder %s655_s5, %s494_s22  ;;  %p498_p6 = scmp.lt.u32.totalorder %s494_s22, %s655_s5 }
 0x1e8   :  { %p500_p7 = pnand %p498_p6, %p495_p5 }
 0x1ea   :  { %503 = shalt.err (!%p500_p7)
}
 0x1eb   :  { %386 = dma.vmem_to_hbm [thread:$0]  %s384_s19, 16, %s655_s5, [#allocation4]  }
 0x1ec   :  { %504 = dma.done.wait [#allocation4], 16  }
 0x1ed   :  { %505 = vsyncadd [#allocation4], 4294967280 }
 0x1ee   :  { %390 = vsyncpa [#allocation4], 1 }

</bundles_post_ra>
